<compile_context>
chip_gen: v5e
topology: v5e:2x2
jax: 0.10.0
libtpu: 0.0.40
codegen_flags: <defaults>
</compile_context>

<pallas_src>
import jax
import jax.numpy as jnp
import numpy as np
from jax.experimental import pallas as pl
from jax.experimental.pallas import tpu as pltpu


def _logreg_kernel(x_ref, w_ref, b_ref, out_ref):
    # x_ref: (TB, D)   w_ref: (D, O)   b_ref: (1, O)   out_ref: (TB, O)
    # Single MXU push for the whole batch tile, f32 accumulation.
    logits = (jnp.dot(x_ref[...], w_ref[...], preferred_element_type=jnp.float32)
              + b_ref[...])
    # Numerically stable softmax over the last (output) dimension.
    m = jnp.max(logits, axis=-1, keepdims=True)
    e = jnp.exp(logits - m)
    s = jnp.sum(e, axis=-1, keepdims=True)
    # One full-block store (no sub-lane column slicing).
    out_ref[...] = (e / s).astype(out_ref.dtype)


def logistic_regressor_forward(x, weight, bias, *, block_b=128):
    """softmax(x @ weight.T + bias, axis=-1).

    x: (B, D) float32 ; weight: (O, D) ; bias: (O,).  Returns (B, O) float32.
    """
    B, D = x.shape
    O = weight.shape[0]

    x = x.astype(jnp.float32)
    w_t = weight.astype(jnp.float32).T            # (D, O) — pre-transposed once
    b2d = bias.astype(jnp.float32).reshape(1, O)  # (1, O)

    # Small batches: one block.  Large batches: tile in chunks of `block_b`
    # (multiple of 8 sublanes) so the grid can be sharded across TensorCores.
    tb = B if B <= block_b else block_b
    grid = (pl.cdiv(B, tb),)

    return pl.pallas_call(
        _logreg_kernel,
        out_shape=jax.ShapeDtypeStruct((B, O), jnp.float32),
        grid=grid,
        in_specs=[
            pl.BlockSpec((tb, D), lambda i: (i, 0)),   # batch tile of x
            pl.BlockSpec((D, O), lambda i: (0, 0)),    # full weight (resident)
            pl.BlockSpec((1, O), lambda i: (0, 0)),    # full bias (resident)
        ],
        out_specs=pl.BlockSpec((tb, O), lambda i: (i, 0)),
        compiler_params=pltpu.CompilerParams(
            dimension_semantics=("parallel",)),        # megacore batch split (v7x)
    )(x, w_t, b2d)


# ----------------------- pure-JAX reference (for checking) ------------------
def logistic_regressor_ref(x, weight, bias):
    logits = x @ weight.T + bias
    return jax.nn.softmax(logits, axis=-1)


if __name__ == "__main__":
    # Small shapes consistent with the module: x (B, input_dim), output_dim=3.
    B, D, O = 8, 32, 3

    key = jax.random.PRNGKey(0)
    kx, kw, kb = jax.random.split(key, 3)
    x = jax.random.normal(kx, (B, D), dtype=jnp.float32)

    # PyTorch-style Linear init: uniform(-1/sqrt(in_features), 1/sqrt(in_features)).
    bound = 1.0 / np.sqrt(D)
    weight = jax.random.uniform(kw, (O, D), jnp.float32, -bound, bound)
    bias = jax.random.uniform(kb, (O,), jnp.float32, -bound, bound)

    out = logistic_regressor_forward(x, weight, bias)
    out = jax.block_until_ready(out)

    ref = logistic_regressor_ref(x, weight, bias)
    np.testing.assert_allclose(np.asarray(out), np.asarray(ref), rtol=1e-5, atol=1e-6)
    assert out.shape == (B, O)
    np.testing.assert_allclose(np.asarray(out).sum(axis=-1), np.ones(B),
                               rtol=1e-5, atol=1e-5)

    print("KERNEL_OK")
</pallas_src>

<mosaic_0001>
module attributes {stable_mosaic.version = 11 : i64} {
  func.func @_logreg_kernel(%arg0: i32, %arg1: memref<8x32xf32, #tpu.memory_space<vmem>>, %arg2: memref<32x3xf32, #tpu.memory_space<vmem>>, %arg3: memref<1x3xf32, #tpu.memory_space<vmem>>, %arg4: memref<8x3xf32, #tpu.memory_space<vmem>>) attributes {dimension_semantics = [#tpu.dimension_semantics<parallel>], iteration_bounds = array<i64: 1>, scalar_prefetch = 0 : i64, scratch_operands = 0 : i64, tpu.core_type = #tpu.core_type<tc>, window_params = [{transform_indices = @transform_0, window_bounds = array<i64: 8, 32>}, {pipeline_mode = #tpu.pipeline_mode<synchronous>, transform_indices = @transform_1, window_bounds = array<i64: 32, 3>}, {pipeline_mode = #tpu.pipeline_mode<synchronous>, transform_indices = @transform_2, window_bounds = array<i64: 1, 3>}, {transform_indices = @transform_3, window_bounds = array<i64: 8, 3>}]} {
    %c0 = arith.constant 0 : index
    %c0_0 = arith.constant 0 : index
    %0 = vector.load %arg1[%c0, %c0_0] : memref<8x32xf32, #tpu.memory_space<vmem>>, vector<8x32xf32>
    %c0_1 = arith.constant 0 : index
    %c0_2 = arith.constant 0 : index
    %1 = vector.load %arg2[%c0_1, %c0_2] : memref<32x3xf32, #tpu.memory_space<vmem>>, vector<32x3xf32>
    %cst = arith.constant dense<0.000000e+00> : vector<8x3xf32>
    %2 = tpu.matmul %0, %1, %cst {dimension_numbers = #tpu.dot_dimension_numbers<[1], [0], [0], [1], [0, 0, 1, 1], [], []>} : vector<8x32xf32>, vector<32x3xf32>, vector<8x3xf32> -> vector<8x3xf32>
    %c0_3 = arith.constant 0 : index
    %c0_4 = arith.constant 0 : index
    %3 = vector.load %arg3[%c0_3, %c0_4] : memref<1x3xf32, #tpu.memory_space<vmem>>, vector<1x3xf32>
    %4 = vector.broadcast %3 : vector<1x3xf32> to vector<8x3xf32>
    %5 = arith.addf %2, %4 : vector<8x3xf32>
    %cst_5 = arith.constant dense<0xFF800000> : vector<8xf32>
    %6 = vector.multi_reduction <maximumf>, %5, %cst_5 [1] : vector<8x3xf32> to vector<8xf32>
    %7 = vector.shape_cast %6 : vector<8xf32> to vector<8x1xf32>
    %8 = vector.broadcast %7 : vector<8x1xf32> to vector<8x3xf32>
    %9 = arith.subf %5, %8 : vector<8x3xf32>
    %10 = math.exp %9 : vector<8x3xf32>
    %cst_6 = arith.constant dense<0.000000e+00> : vector<8xf32>
    %11 = vector.multi_reduction <add>, %10, %cst_6 [1] : vector<8x3xf32> to vector<8xf32>
    %12 = vector.shape_cast %11 : vector<8xf32> to vector<8x1xf32>
    %13 = vector.broadcast %12 : vector<8x1xf32> to vector<8x3xf32>
    %14 = arith.divf %10, %13 : vector<8x3xf32>
    %c0_7 = arith.constant 0 : index
    %c0_8 = arith.constant 0 : index
    %15 = vector.load %arg4[%c0_7, %c0_8] : memref<8x3xf32, #tpu.memory_space<vmem>>, vector<8x3xf32>
    tpu.vector_store %arg4[%c0_7, %c0_8], %14 {strides = array<i32>} : memref<8x3xf32, #tpu.memory_space<vmem>>, vector<8x3xf32>,
    return
  }
  func.func @transform_0(%arg0: i32) -> (i32, i32) {
    %c0_i32 = arith.constant 0 : i32
    %c0_i32_0 = arith.constant 0 : i32
    return %arg0, %c0_i32 : i32, i32
  }
  func.func @transform_1(%arg0: i32) -> (i32, i32) {
    %c0_i32 = arith.constant 0 : i32
    %c0_i32_0 = arith.constant 0 : i32
    %c0_i32_1 = arith.constant 0 : i32
    return %c0_i32, %c0_i32_0 : i32, i32
  }
  func.func @transform_2(%arg0: i32) -> (i32, i32) {
    %c0_i32 = arith.constant 0 : i32
    %c0_i32_0 = arith.constant 0 : i32
    %c0_i32_1 = arith.constant 0 : i32
    return %c0_i32, %c0_i32_0 : i32, i32
  }
  func.func @transform_3(%arg0: i32) -> (i32, i32) {
    %c0_i32 = arith.constant 0 : i32
    %c0_i32_0 = arith.constant 0 : i32
    return %arg0, %c0_i32 : i32, i32
  }
}

</mosaic_0001>

<bundles_post_ra>
// kernel: tpu_custom_call.1
= control target key start
LH: loop header
LB: loop body
LE: loop exit
PB: predicated region body
PF: predicated region fallthrough
CT: control target
= control target key end

     0   :  { %vm23_vm0 = vcmask 261120   ;;  %vm47_vm1 = vcmask 23552   ;;  %s127_s1 = inlined_call_operand.vmem [shape: f32[32,3], index: 1, kind: input, shape index: {}]   ;;  %s128_s2 = inlined_call_operand.vmem [shape: f32[1,3], index: 2, kind: input, shape index: {}]   ;;  %s129_s0 = inlined_call_operand.vmem [shape: f32[8,32], index: 0, kind: input, shape index: {}]   ;;  %s130_s3 = inlined_call_operand.vmem [shape: f32[8,3], index: 3, kind: output, shape index: {}]  }
   0x1   :  { %v18_v0 = vld [vmem:[%s127_s1 + $0x18] sm:$0xff]  ;;  %v17_v1 = vld [vmem:[%s127_s1 + $0x10] sm:$0xff]  ;;  %v16_v2 = vld [vmem:[%s127_s1 + $0x8] sm:$0xff] }
   0x2   :  { %39 = vmatpush.msra.mxu0 %v18_v0  ;;  %v15_v3 = vld [vmem:[%s127_s1] sm:$0xff] }
   0x3   :  { %v14_v4 = vld [vmem:[%s129_s0] sm:$0xff] }
   0x4   :  { %40 = vmatpush.msra.mxu0 %v17_v1  ;;  %v78_v5 = vld [vmem:[%s128_s2] ss:$0 sm:$0xff] }
   0x6   :  { %41 = vmatpush.msra.mxu0 %v16_v2 }
   0x8   :  { %42 = vmatpush.msra.mxu0 %v15_v3 }
   0x9   :  { %77 = vmatmul.msk.f32.vlgmr.msra.gmra.mxu0 %vm23_vm0, %v14_v4 }
  0x86   :  { %v44_v6 = vpop.f32.mrf.mxu0 }
  0x87   :  { %v45_v7 = vadd.f32 %v78_v5, %v44_v6 }
  0x89   :  { %v48_v8 = vsel %vm47_vm1, %v45_v7, -inf }
  0x8a   :  { %49 = vmax.xlane.f32.xlu0 %v48_v8 }
  0xfd   :  { %v50_v9 = vpop.xlane.xlu0 %49 }
  0xfe   :  { %v51_v10 = vsub.f32 %v45_v7, %v50_v9 }
 0x100   :  { %v52_v11 = vmul.f32 1.442695, %v51_v10 }
 0x102   :  { %79 = vpow2.f32 %v52_v11 }
 0x108   :  { %v80_v12 = vpop.eup %79 }
 0x109   :  { %v54_v13 = vsel %vm47_vm1, %v80_v12, 0.0 }
 0x10a   :  { %55 = vadd.xlane.f32.xlu0 %v54_v13 }
 0x17d   :  { %v56_v14 = vpop.xlane.xlu0 %55 }
 0x17e   :  { %81 = vrcp.f32 %v56_v14  ;;  %v68_v18 = vand.u32 2147483648, %v56_v14  ;;  %v66_v20 = vand.u32 2147483647, %v56_v14  ;;  %vm62_vm3 = vweird.f32 %v56_v14 }
 0x180   :  { %v69_v22 = vor.u32 1.1754944e-38, %v68_v18  ;;  %vm67_vm5 = vcmp.eq.f32.partialorder %v66_v20, 8.507059e+37 }
 0x184   :  { %v82_v15 = vpop.eup %81 }
 0x185   :  { %v58_v16 = vmul.f32 %v82_v15, %v56_v14  ;;  %vm63_vm2 = vweird.f32 %v82_v15 }
 0x186   :  { %vm64_vm4 = vmor %vm62_vm3, %vm63_vm2 }
 0x187   :  { %v59_v17 = vsub.f32 1.0, %v58_v16 }
 0x189   :  { %v60_v19 = vmul.f32 %v82_v15, %v59_v17 }
 0x18b   :  { %v61_v21 = vadd.f32 %v82_v15, %v60_v19 }
 0x18d   :  { %v65_v23 = vsel %vm64_vm4, %v82_v15, %v61_v21 }
 0x18e   :  { %v70_v24 = vsel %vm67_vm5, %v69_v22, %v65_v23 }
 0x18f   :  { %v71_v25 = vmul.f32 %v80_v12, %v70_v24 }
 0x191   :  { %72 = vst.msk [vmem:[%s130_s3] sm:$0xff] %vm47_vm1, %v71_v25 }

</bundles_post_ra>
